<compile_context>
chip_gen: v5e
topology: v5e:2x2
jax: 0.10.0
libtpu: 0.0.40
codegen_flags: <defaults>
</compile_context>

<pallas_src>
import numpy as np
import jax
import jax.numpy as jnp
from jax import lax
from jax.experimental import pallas as pl
from jax.experimental.pallas import tpu as pltpu


# --------------------------------------------------------------------------- #
# Hardware query
# --------------------------------------------------------------------------- #
def _tpu_params():
    """(vmem_capacity_bytes, tensorcore_count); conservative defaults on failure."""
    vmem = 64 * 1024 * 1024          # v7x floor
    cores = 1                        # v5e / v6e
    try:
        info = pltpu.get_tpu_info()
        v = int(getattr(info, "vmem_capacity_bytes", 0) or 0)
        if v > 0:
            vmem = v
        for name in ("num_cores", "core_count", "num_tensorcores", "tensorcore_count"):
            c = getattr(info, name, None)
            if c:
                cores = max(1, int(c))
                break
    except Exception:
        pass
    return vmem, cores


# --------------------------------------------------------------------------- #
# Fused single-pass path
# --------------------------------------------------------------------------- #
def _fused_forward(x_flat, w12, w3t, bb, vmem_limit):
    """x_flat: (B, C, hw); w12: (6, mid) f32; w3t: (3, mid) f32; bb divides B."""
    B, C, hw = x_flat.shape
    mid = int(w12.shape[1])
    inv_hw = 1.0 / float(hw)
    itemsize = x_flat.dtype.itemsize

    def kernel(x_ref, w12_ref, w3_ref, o_ref, pad_a, pad_m):
        xb = x_ref[...]                                                 # (bb, C, hw) native

        # ---- pooled stats: f32 accumulation, C stays on the sublane axis ----
        avg = jnp.sum(xb.astype(jnp.float32), axis=-1, keepdims=True) * inv_hw   # (bb, C, 1)
        mx = jnp.max(xb, axis=-1, keepdims=True).astype(jnp.float32)             # (bb, C, 1)

        # ---- +-1 channel shifts via zero-padded scratches (sublane slices) ----
        pad_a[...] = jnp.zeros_like(pad_a)
        pad_m[...] = jnp.zeros_like(pad_m)
        pad_a[:, 1:C + 1, :] = avg
        pad_m[:, 1:C + 1, :] = mx
        a_m1 = pad_a[:, 0:C, :]          # avg[c-1] (0 at c=0)
        a_p1 = pad_a[:, 2:C + 2, :]      # avg[c+1] (0 at c=C-1)
        m_m1 = pad_m[:, 0:C, :]
        m_p1 = pad_m[:, 2:C + 2, :]

        w12v = w12_ref[...]              # (6, mid) f32, mid on lanes
        w3v = w3_ref[...]                # (3, mid) f32

        def wrow(w, f):                  # -> (1, 1, mid), mid on lanes
            return w[f:f + 1, :][None]

        # ---- conv1 + conv2 -> relu, batched over mid on the lane axis ----
        t = (a_m1 * wrow(w12v, 0) + avg * wrow(w12v, 1) + a_p1 * wrow(w12v, 2)
             + m_m1 * wrow(w12v, 3) + mx * wrow(w12v, 4) + m_p1 * wrow(w12v, 5))
        t = jnp.maximum(t, 0.0)                                          # (bb, C, mid)

        # ---- conv3: y_k = sum_m w3[m,k] * t[:, :, m]; then shift y0/y2 over C ----
        y0 = jnp.sum(t * wrow(w3v, 0), axis=-1, keepdims=True)           # (bb, C, 1)
        y1 = jnp.sum(t * wrow(w3v, 1), axis=-1, keepdims=True)
        y2 = jnp.sum(t * wrow(w3v, 2), axis=-1, keepdims=True)

        # z[c] = y0[c-1] + y1[c] + y2[c+1]; reuse the (already consumed) scratches.
        pad_a[...] = jnp.zeros_like(pad_a)
        pad_m[...] = jnp.zeros_like(pad_m)
        pad_a[:, 1:C + 1, :] = y0
        pad_m[:, 1:C + 1, :] = y2
        z = y1 + pad_a[:, 0:C, :] + pad_m[:, 2:C + 2, :]                  # (bb, C, 1)

        s = jax.nn.sigmoid(z)                                             # (bb, C, 1) f32

        # ---- rescale in the native dtype (cast s, not the big tile) ----
        o_ref[...] = (xb * s.astype(xb.dtype)).astype(o_ref.dtype)

    block = (bb, C, hw)
    cost = pl.CostEstimate(
        flops=int(3 * B * C * hw + 18 * B * C * max(1, mid)),
        transcendentals=int(B * C),
        bytes_accessed=int(2 * B * C * hw * itemsize))

    return pl.pallas_call(
        kernel,
        out_shape=jax.ShapeDtypeStruct((B, C, hw), x_flat.dtype),
        grid_spec=pltpu.PrefetchScalarGridSpec(
            num_scalar_prefetch=0,
            grid=(B // bb,),
            in_specs=[
                pl.BlockSpec(block, lambda i: (i, 0, 0)),
                pl.BlockSpec(memory_space=pltpu.MemorySpace.VMEM),   # w12 (6, mid) f32
                pl.BlockSpec(memory_space=pltpu.MemorySpace.VMEM),   # w3  (3, mid) f32
            ],
            out_specs=pl.BlockSpec(block, lambda i: (i, 0, 0)),
            scratch_shapes=[
                pltpu.VMEM((bb, C + 2, 1), jnp.float32),   # zero-padded shift buffer A
                pltpu.VMEM((bb, C + 2, 1), jnp.float32),   # zero-padded shift buffer B
            ],
        ),
        compiler_params=pltpu.CompilerParams(
            dimension_semantics=("parallel",),
            vmem_limit_bytes=int(vmem_limit)),
        cost_estimate=cost,
    )(x_flat, w12, w3t)


# --------------------------------------------------------------------------- #
# Two-pass fallback (images too large for VMEM even at one image per block)
# --------------------------------------------------------------------------- #
def _pooled_stats(x_flat, hw_chunk, vmem_limit):
    """Chunked sum / max over the flattened spatial axis. Returns ((B,C), (B,C)) f32."""
    B, C, hw = x_flat.shape
    n_chunks = (hw + hw_chunk - 1) // hw_chunk

    def stats_kernel(x_ref, sum_ref, max_ref):
        c = pl.program_id(1)
        xb = x_ref[...].astype(jnp.float32)                       # (1, C, hw_chunk)
        lane = lax.broadcasted_iota(jnp.int32, xb.shape, 2) + c * hw_chunk
        valid = lane < hw
        part_sum = jnp.sum(jnp.where(valid, xb, 0.0), axis=-1, keepdims=True)
        part_max = jnp.max(jnp.where(valid, xb, -jnp.inf), axis=-1, keepdims=True)

        @pl.when(c == 0)
        def _():
            sum_ref[...] = jnp.zeros_like(sum_ref)
            max_ref[...] = jnp.full_like(max_ref, -jnp.inf)

        sum_ref[...] = sum_ref[...] + part_sum
        max_ref[...] = jnp.maximum(max_ref[...], part_max)

    sums, maxs = pl.pallas_call(
        stats_kernel,
        out_shape=(jax.ShapeDtypeStruct((B, C, 1), jnp.float32),
                   jax.ShapeDtypeStruct((B, C, 1), jnp.float32)),
        grid_spec=pltpu.PrefetchScalarGridSpec(
            num_scalar_prefetch=0,
            grid=(B, n_chunks),
            in_specs=[pl.BlockSpec((1, C, hw_chunk), lambda b, c: (b, 0, c))],
            out_specs=(pl.BlockSpec((1, C, 1), lambda b, c: (b, 0, 0)),
                       pl.BlockSpec((1, C, 1), lambda b, c: (b, 0, 0))),
        ),
        compiler_params=pltpu.CompilerParams(
            dimension_semantics=("parallel", "arbitrary"),
            vmem_limit_bytes=int(vmem_limit)),
    )(x_flat)
    return sums[..., 0], maxs[..., 0]


def _rescale(x_flat, s3, hw_chunk, vmem_limit):
    """out = x * s, HW-chunked.  x_flat: (B, C, hw); s3: (B, C, 1) f32."""
    B, C, hw = x_flat.shape
    n_chunks = (hw + hw_chunk - 1) // hw_chunk

    def rescale_kernel(x_ref, s_ref, o_ref):
        o_ref[...] = x_ref[...] * s_ref[...].astype(x_ref.dtype)

    return pl.pallas_call(
        rescale_kernel,
        out_shape=jax.ShapeDtypeStruct((B, C, hw), x_flat.dtype),
        grid_spec=pltpu.PrefetchScalarGridSpec(
            num_scalar_prefetch=0,
            grid=(B, n_chunks),
            in_specs=[pl.BlockSpec((1, C, hw_chunk), lambda b, c: (b, 0, c)),
                      pl.BlockSpec((1, C, 1), lambda b, c: (b, 0, 0))],
            out_specs=pl.BlockSpec((1, C, hw_chunk), lambda b, c: (b, 0, c)),
        ),
        compiler_params=pltpu.CompilerParams(
            dimension_semantics=("parallel", "parallel"),
            vmem_limit_bytes=int(vmem_limit)),
    )(x_flat, s3)


def _scale_from_stats(avg, mx, w1s, w2s, w3s):
    """Pure-JAX conv1/conv2 -> relu -> conv3 -> sigmoid on (B, C) pooled stats (tiny)."""
    B, C = avg.shape
    ap = jnp.pad(avg, ((0, 0), (1, 1)))
    mp = jnp.pad(mx, ((0, 0), (1, 1)))
    t = sum(ap[:, k:k + C, None] * w1s[None, None, :, k]
            + mp[:, k:k + C, None] * w2s[None, None, :, k] for k in range(3))   # (B, C, mid)
    t = jax.nn.relu(t)
    tp = jnp.pad(t, ((0, 0), (1, 1), (0, 0)))
    z = sum(jnp.einsum("bcm,m->bc", tp[:, k:k + C, :], w3s[:, k]) for k in range(3))
    return jax.nn.sigmoid(z)                                                    # (B, C)


# --------------------------------------------------------------------------- #
# Public wrapper
# --------------------------------------------------------------------------- #
def channel_attention_eca(x, w1, w2, w3, *, force_two_pass=False, _two_pass_chunk=None):
    """x: (B, C, H, W); w1, w2: (mid, 1, 3); w3: (1, mid, 3).  bias=False convs."""
    B, C, H, W = x.shape
    mid = int(w1.shape[0])
    if mid < 1:
        raise ValueError("MyChannelAttention_eca requires in_planes // ratio >= 1")
    hw = H * W
    itemsize = x.dtype.itemsize
    x_flat = x.reshape(B, C, hw)                       # free reshape (no copy)

    w1s = w1.reshape(mid, 3).astype(jnp.float32)
    w2s = w2.reshape(mid, 3).astype(jnp.float32)
    w3s = w3.reshape(mid, 3).astype(jnp.float32)

    vmem_cap, n_cores = _tpu_params()
    vmem_limit = int(vmem_cap * 0.85)                  # <=85% of physical VMEM (v7x headroom)
    budget = int(vmem_limit * 0.80)                    # room for scratch/weights/f32 temps

    per_img = C * hw * itemsize
    extra_f32 = C * hw * 4 if itemsize < 4 else 0      # f32 reduce temp for low-precision x

    def vmem_need(nimg):                               # in + out, double-buffered, + margin
        return nimg * (4 * per_img + extra_f32) + (2 << 20)

    if force_two_pass or vmem_need(1) > budget:
        # ---- fallback: HW-chunked stats pass + tiny JAX conv + HW-chunked rescale ----
        # TODO(synk): also chunk the channel axis if C alone makes a (1, C, 128) block
        # exceed VMEM (not expected for realistic channel counts).
        if _two_pass_chunk is not None:
            hw_chunk = int(_two_pass_chunk)
        else:
            per_lane = C * (4 * itemsize + 8)
            hw_chunk = max(128, (budget // max(1, per_lane)) // 128 * 128)
        if hw_chunk >= hw:
            hw_chunk = hw                              # full spatial extent in one block
        sums, maxs = _pooled_stats(x_flat, hw_chunk, vmem_limit)
        s = _scale_from_stats(sums * (1.0 / float(hw)), maxs, w1s, w2s, w3s)   # (B, C)
        out_flat = _rescale(x_flat, s[..., None], hw_chunk, vmem_limit)
        return out_flat.reshape(B, C, H, W)

    # ---- fused single-pass path ----
    # bb = largest divisor of B whose blocks fit the VMEM budget.  On multi-TC chips
    # (v7x) prefer a grid-step count that splits evenly across cores; on single-TC
    # chips (v5e/v6e) just take the biggest block (no artificial >=2-step cap).
    fitting = [d for d in range(1, B + 1) if B % d == 0 and vmem_need(d) <= budget]
    if n_cores > 1:
        balanced = [d for d in fitting if (B // d) % n_cores == 0]
        bb = max(balanced) if balanced else max(fitting)
    else:
        bb = max(fitting)

    # Weight layout for the kernel: rows = conv taps (-1, 0, +1) of conv1 then conv2,
    # mid on the lane axis.  w3t rows = conv3 taps (-1, 0, +1).
    w12 = jnp.concatenate([w1s.T, w2s.T], axis=0)      # (6, mid) f32
    w3t = w3s.T                                        # (3, mid) f32

    out_flat = _fused_forward(x_flat, w12, w3t, bb, vmem_limit)
    return out_flat.reshape(B, C, H, W)


# --------------------------------------------------------------------------- #
# Pure-JAX reference (mirrors the PyTorch forward exactly)
# --------------------------------------------------------------------------- #
def _ref_forward(x, w1, w2, w3):
    B, C, H, W = x.shape
    avg = x.mean(axis=(2, 3))            # (B, C)
    mx = x.max(axis=(2, 3))              # (B, C)
    w1 = w1[:, 0, :]
    w2 = w2[:, 0, :]
    w3 = w3[0]
    mid = w1.shape[0]

    def conv_c(v, w):                    # v: (B, C) -> (B, C, mid)
        vp = jnp.pad(v, ((0, 0), (1, 1)))
        cols = [sum(w[m, k] * vp[:, k:k + C] for k in range(3)) for m in range(mid)]
        return jnp.stack(cols, axis=-1)

    t = jax.nn.relu(conv_c(avg, w1) + conv_c(mx, w2))        # (B, C, mid)
    tp = jnp.pad(t, ((0, 0), (1, 1), (0, 0)))
    z = sum(w3[m, k] * tp[:, k:k + C, m] for m in range(mid) for k in range(3))
    s = jax.nn.sigmoid(z)                                    # (B, C)
    return x * s[:, :, None, None]


# --------------------------------------------------------------------------- #
# Self-test
# --------------------------------------------------------------------------- #
if __name__ == "__main__":
    ratio = 4

    def make_inputs(B, C, H, W, seed=0):
        mid = max(1, C // ratio)
        key = jax.random.PRNGKey(seed)
        kx, k1, k2, k3 = jax.random.split(key, 4)
        x = jax.random.normal(kx, (B, C, H, W), dtype=jnp.float32)
        # Deterministic synthetic conv weights (shapes from nn.Conv1d, bias=False).
        b1 = 1.0 / np.sqrt(1 * 3)
        b3 = 1.0 / np.sqrt(mid * 3)
        w1 = jax.random.uniform(k1, (mid, 1, 3), minval=-b1, maxval=b1, dtype=jnp.float32)
        w2 = jax.random.uniform(k2, (mid, 1, 3), minval=-b1, maxval=b1, dtype=jnp.float32)
        w3 = jax.random.uniform(k3, (1, mid, 3), minval=-b3, maxval=b3, dtype=jnp.float32)
        return x, w1, w2, w3

    # 1) fused single-pass path, lane-aligned spatial size (HW = 256)
    x, w1, w2, w3 = make_inputs(2, 8, 16, 16, seed=0)
    out = jax.block_until_ready(channel_attention_eca(x, w1, w2, w3))
    np.testing.assert_allclose(np.asarray(out), np.asarray(_ref_forward(x, w1, w2, w3)),
                               rtol=1e-5, atol=1e-5)

    # 2) fused path, ragged spatial size (HW = 100, not a multiple of 128)
    x, w1, w2, w3 = make_inputs(2, 8, 10, 10, seed=1)
    out = jax.block_until_ready(channel_attention_eca(x, w1, w2, w3))
    np.testing.assert_allclose(np.asarray(out), np.asarray(_ref_forward(x, w1, w2, w3)),
                               rtol=1e-5, atol=1e-5)

    # 3) two-pass fallback (stats + rescale), chunked with a ragged tail chunk
    x, w1, w2, w3 = make_inputs(2, 8, 18, 18, seed=2)
    out = jax.block_until_ready(
        channel_attention_eca(x, w1, w2, w3, force_two_pass=True, _two_pass_chunk=128))
    np.testing.assert_allclose(np.asarray(out), np.asarray(_ref_forward(x, w1, w2, w3)),
                               rtol=1e-5, atol=1e-5)

    print("KERNEL_OK")
</pallas_src>

<mosaic_0001>
module attributes {stable_mosaic.version = 11 : i64} {
  func.func @kernel(%arg0: i32, %arg1: memref<2x8x256xf32, #tpu.memory_space<vmem>>, %arg2: memref<6x2xf32, #tpu.memory_space<vmem>>, %arg3: memref<3x2xf32, #tpu.memory_space<vmem>>, %arg4: memref<2x8x256xf32, #tpu.memory_space<vmem>>, %arg5: memref<2x10x1xf32, #tpu.memory_space<vmem>>, %arg6: memref<2x10x1xf32, #tpu.memory_space<vmem>>) attributes {dimension_semantics = [#tpu.dimension_semantics<parallel>], iteration_bounds = array<i64: 1>, scalar_prefetch = 0 : i64, scratch_operands = 2 : i64, tpu.core_type = #tpu.core_type<tc>, window_params = [{transform_indices = @transform_0, window_bounds = array<i64: 2, 8, 256>}, {pipeline_mode = #tpu.pipeline_mode<synchronous>, transform_indices = @transform_1, window_bounds = array<i64: 6, 2>}, {pipeline_mode = #tpu.pipeline_mode<synchronous>, transform_indices = @transform_2, window_bounds = array<i64: 3, 2>}, {transform_indices = @transform_3, window_bounds = array<i64: 2, 8, 256>}]} {
    %c0 = arith.constant 0 : index
    %c0_0 = arith.constant 0 : index
    %c0_1 = arith.constant 0 : index
    %0 = vector.load %arg1[%c0, %c0_0, %c0_1] : memref<2x8x256xf32, #tpu.memory_space<vmem>>, vector<2x8x256xf32>
    %cst = arith.constant dense<0.000000e+00> : vector<2x8xf32>
    %1 = vector.multi_reduction <add>, %0, %cst [2] : vector<2x8x256xf32> to vector<2x8xf32>
    %2 = vector.shape_cast %1 : vector<2x8xf32> to vector<2x8x1xf32>
    %cst_2 = arith.constant 3.906250e-03 : f32
    %3 = vector.broadcast %cst_2 : f32 to vector<2x8x1xf32>
    %4 = arith.mulf %2, %3 : vector<2x8x1xf32>
    %cst_3 = arith.constant dense<0xFF800000> : vector<2x8xf32>
    %5 = vector.multi_reduction <maximumf>, %0, %cst_3 [2] : vector<2x8x256xf32> to vector<2x8xf32>
    %6 = vector.shape_cast %5 : vector<2x8xf32> to vector<2x8x1xf32>
    %cst_4 = arith.constant 0.000000e+00 : f32
    %7 = vector.broadcast %cst_4 : f32 to vector<2x10x1xf32>
    %c0_5 = arith.constant 0 : index
    %c0_6 = arith.constant 0 : index
    %c0_7 = arith.constant 0 : index
    %8 = vector.load %arg5[%c0_5, %c0_6, %c0_7] : memref<2x10x1xf32, #tpu.memory_space<vmem>>, vector<2x10x1xf32>
    tpu.vector_store %arg5[%c0_5, %c0_6, %c0_7], %7 {strides = array<i32>} : memref<2x10x1xf32, #tpu.memory_space<vmem>>, vector<2x10x1xf32>,
    %cst_8 = arith.constant 0.000000e+00 : f32
    %9 = vector.broadcast %cst_8 : f32 to vector<2x10x1xf32>
    %c0_9 = arith.constant 0 : index
    %c0_10 = arith.constant 0 : index
    %c0_11 = arith.constant 0 : index
    %10 = vector.load %arg6[%c0_9, %c0_10, %c0_11] : memref<2x10x1xf32, #tpu.memory_space<vmem>>, vector<2x10x1xf32>
    tpu.vector_store %arg6[%c0_9, %c0_10, %c0_11], %9 {strides = array<i32>} : memref<2x10x1xf32, #tpu.memory_space<vmem>>, vector<2x10x1xf32>,
    %c0_12 = arith.constant 0 : index
    %c1 = arith.constant 1 : index
    %c0_13 = arith.constant 0 : index
    %11 = vector.load %arg5[%c0_12, %c1, %c0_13] : memref<2x10x1xf32, #tpu.memory_space<vmem>>, vector<2x8x1xf32>
    tpu.vector_store %arg5[%c0_12, %c1, %c0_13], %4 {strides = array<i32>} : memref<2x10x1xf32, #tpu.memory_space<vmem>>, vector<2x8x1xf32>,
    %c0_14 = arith.constant 0 : index
    %c1_15 = arith.constant 1 : index
    %c0_16 = arith.constant 0 : index
    %12 = vector.load %arg6[%c0_14, %c1_15, %c0_16] : memref<2x10x1xf32, #tpu.memory_space<vmem>>, vector<2x8x1xf32>
    tpu.vector_store %arg6[%c0_14, %c1_15, %c0_16], %6 {strides = array<i32>} : memref<2x10x1xf32, #tpu.memory_space<vmem>>, vector<2x8x1xf32>,
    %c0_17 = arith.constant 0 : index
    %c0_18 = arith.constant 0 : index
    %c0_19 = arith.constant 0 : index
    %13 = vector.load %arg5[%c0_17, %c0_18, %c0_19] : memref<2x10x1xf32, #tpu.memory_space<vmem>>, vector<2x8x1xf32>
    %c0_20 = arith.constant 0 : index
    %c2 = arith.constant 2 : index
    %c0_21 = arith.constant 0 : index
    %14 = vector.load %arg5[%c0_20, %c2, %c0_21] : memref<2x10x1xf32, #tpu.memory_space<vmem>>, vector<2x8x1xf32>
    %c0_22 = arith.constant 0 : index
    %c0_23 = arith.constant 0 : index
    %c0_24 = arith.constant 0 : index
    %15 = vector.load %arg6[%c0_22, %c0_23, %c0_24] : memref<2x10x1xf32, #tpu.memory_space<vmem>>, vector<2x8x1xf32>
    %c0_25 = arith.constant 0 : index
    %c2_26 = arith.constant 2 : index
    %c0_27 = arith.constant 0 : index
    %16 = vector.load %arg6[%c0_25, %c2_26, %c0_27] : memref<2x10x1xf32, #tpu.memory_space<vmem>>, vector<2x8x1xf32>
    %c0_28 = arith.constant 0 : index
    %c0_29 = arith.constant 0 : index
    %17 = vector.load %arg2[%c0_28, %c0_29] : memref<6x2xf32, #tpu.memory_space<vmem>>, vector<6x2xf32>
    %c0_30 = arith.constant 0 : index
    %c0_31 = arith.constant 0 : index
    %18 = vector.load %arg3[%c0_30, %c0_31] : memref<3x2xf32, #tpu.memory_space<vmem>>, vector<3x2xf32>
    %19 = vector.extract_strided_slice %17 {offsets = [0, 0], sizes = [1, 2], strides = [1, 1]} : vector<6x2xf32> to vector<1x2xf32>
    %20 = vector.shape_cast %19 : vector<1x2xf32> to vector<1x1x2xf32>
    %21 = vector.broadcast %13 : vector<2x8x1xf32> to vector<2x8x2xf32>
    %22 = vector.broadcast %20 : vector<1x1x2xf32> to vector<2x8x2xf32>
    %23 = arith.mulf %21, %22 : vector<2x8x2xf32>
    %24 = vector.extract_strided_slice %17 {offsets = [1, 0], sizes = [1, 2], strides = [1, 1]} : vector<6x2xf32> to vector<1x2xf32>
    %25 = vector.shape_cast %24 : vector<1x2xf32> to vector<1x1x2xf32>
    %26 = vector.broadcast %4 : vector<2x8x1xf32> to vector<2x8x2xf32>
    %27 = vector.broadcast %25 : vector<1x1x2xf32> to vector<2x8x2xf32>
    %28 = arith.mulf %26, %27 : vector<2x8x2xf32>
    %29 = arith.addf %23, %28 : vector<2x8x2xf32>
    %30 = vector.extract_strided_slice %17 {offsets = [2, 0], sizes = [1, 2], strides = [1, 1]} : vector<6x2xf32> to vector<1x2xf32>
    %31 = vector.shape_cast %30 : vector<1x2xf32> to vector<1x1x2xf32>
    %32 = vector.broadcast %14 : vector<2x8x1xf32> to vector<2x8x2xf32>
    %33 = vector.broadcast %31 : vector<1x1x2xf32> to vector<2x8x2xf32>
    %34 = arith.mulf %32, %33 : vector<2x8x2xf32>
    %35 = arith.addf %29, %34 : vector<2x8x2xf32>
    %36 = vector.extract_strided_slice %17 {offsets = [3, 0], sizes = [1, 2], strides = [1, 1]} : vector<6x2xf32> to vector<1x2xf32>
    %37 = vector.shape_cast %36 : vector<1x2xf32> to vector<1x1x2xf32>
    %38 = vector.broadcast %15 : vector<2x8x1xf32> to vector<2x8x2xf32>
    %39 = vector.broadcast %37 : vector<1x1x2xf32> to vector<2x8x2xf32>
    %40 = arith.mulf %38, %39 : vector<2x8x2xf32>
    %41 = arith.addf %35, %40 : vector<2x8x2xf32>
    %42 = vector.extract_strided_slice %17 {offsets = [4, 0], sizes = [1, 2], strides = [1, 1]} : vector<6x2xf32> to vector<1x2xf32>
    %43 = vector.shape_cast %42 : vector<1x2xf32> to vector<1x1x2xf32>
    %44 = vector.broadcast %6 : vector<2x8x1xf32> to vector<2x8x2xf32>
    %45 = vector.broadcast %43 : vector<1x1x2xf32> to vector<2x8x2xf32>
    %46 = arith.mulf %44, %45 : vector<2x8x2xf32>
    %47 = arith.addf %41, %46 : vector<2x8x2xf32>
    %48 = vector.extract_strided_slice %17 {offsets = [5, 0], sizes = [1, 2], strides = [1, 1]} : vector<6x2xf32> to vector<1x2xf32>
    %49 = vector.shape_cast %48 : vector<1x2xf32> to vector<1x1x2xf32>
    %50 = vector.broadcast %16 : vector<2x8x1xf32> to vector<2x8x2xf32>
    %51 = vector.broadcast %49 : vector<1x1x2xf32> to vector<2x8x2xf32>
    %52 = arith.mulf %50, %51 : vector<2x8x2xf32>
    %53 = arith.addf %47, %52 : vector<2x8x2xf32>
    %cst_32 = arith.constant 0.000000e+00 : f32
    %54 = vector.broadcast %cst_32 : f32 to vector<2x8x2xf32>
    %55 = arith.maximumf %53, %54 : vector<2x8x2xf32>
    %56 = vector.extract_strided_slice %18 {offsets = [0, 0], sizes = [1, 2], strides = [1, 1]} : vector<3x2xf32> to vector<1x2xf32>
    %57 = vector.shape_cast %56 : vector<1x2xf32> to vector<1x1x2xf32>
    %58 = vector.broadcast %57 : vector<1x1x2xf32> to vector<2x8x2xf32>
    %59 = arith.mulf %55, %58 : vector<2x8x2xf32>
    %cst_33 = arith.constant dense<0.000000e+00> : vector<2x8xf32>
    %60 = vector.multi_reduction <add>, %59, %cst_33 [2] : vector<2x8x2xf32> to vector<2x8xf32>
    %61 = vector.shape_cast %60 : vector<2x8xf32> to vector<2x8x1xf32>
    %62 = vector.extract_strided_slice %18 {offsets = [1, 0], sizes = [1, 2], strides = [1, 1]} : vector<3x2xf32> to vector<1x2xf32>
    %63 = vector.shape_cast %62 : vector<1x2xf32> to vector<1x1x2xf32>
    %64 = vector.broadcast %63 : vector<1x1x2xf32> to vector<2x8x2xf32>
    %65 = arith.mulf %55, %64 : vector<2x8x2xf32>
    %cst_34 = arith.constant dense<0.000000e+00> : vector<2x8xf32>
    %66 = vector.multi_reduction <add>, %65, %cst_34 [2] : vector<2x8x2xf32> to vector<2x8xf32>
    %67 = vector.shape_cast %66 : vector<2x8xf32> to vector<2x8x1xf32>
    %68 = vector.extract_strided_slice %18 {offsets = [2, 0], sizes = [1, 2], strides = [1, 1]} : vector<3x2xf32> to vector<1x2xf32>
    %69 = vector.shape_cast %68 : vector<1x2xf32> to vector<1x1x2xf32>
    %70 = vector.broadcast %69 : vector<1x1x2xf32> to vector<2x8x2xf32>
    %71 = arith.mulf %55, %70 : vector<2x8x2xf32>
    %cst_35 = arith.constant dense<0.000000e+00> : vector<2x8xf32>
    %72 = vector.multi_reduction <add>, %71, %cst_35 [2] : vector<2x8x2xf32> to vector<2x8xf32>
    %73 = vector.shape_cast %72 : vector<2x8xf32> to vector<2x8x1xf32>
    %cst_36 = arith.constant 0.000000e+00 : f32
    %74 = vector.broadcast %cst_36 : f32 to vector<2x10x1xf32>
    %c0_37 = arith.constant 0 : index
    %c0_38 = arith.constant 0 : index
    %c0_39 = arith.constant 0 : index
    %75 = vector.load %arg5[%c0_37, %c0_38, %c0_39] : memref<2x10x1xf32, #tpu.memory_space<vmem>>, vector<2x10x1xf32>
    tpu.vector_store %arg5[%c0_37, %c0_38, %c0_39], %74 {strides = array<i32>} : memref<2x10x1xf32, #tpu.memory_space<vmem>>, vector<2x10x1xf32>,
    %cst_40 = arith.constant 0.000000e+00 : f32
    %76 = vector.broadcast %cst_40 : f32 to vector<2x10x1xf32>
    %c0_41 = arith.constant 0 : index
    %c0_42 = arith.constant 0 : index
    %c0_43 = arith.constant 0 : index
    %77 = vector.load %arg6[%c0_41, %c0_42, %c0_43] : memref<2x10x1xf32, #tpu.memory_space<vmem>>, vector<2x10x1xf32>
    tpu.vector_store %arg6[%c0_41, %c0_42, %c0_43], %76 {strides = array<i32>} : memref<2x10x1xf32, #tpu.memory_space<vmem>>, vector<2x10x1xf32>,
    %c0_44 = arith.constant 0 : index
    %c1_45 = arith.constant 1 : index
    %c0_46 = arith.constant 0 : index
    %78 = vector.load %arg5[%c0_44, %c1_45, %c0_46] : memref<2x10x1xf32, #tpu.memory_space<vmem>>, vector<2x8x1xf32>
    tpu.vector_store %arg5[%c0_44, %c1_45, %c0_46], %61 {strides = array<i32>} : memref<2x10x1xf32, #tpu.memory_space<vmem>>, vector<2x8x1xf32>,
    %c0_47 = arith.constant 0 : index
    %c1_48 = arith.constant 1 : index
    %c0_49 = arith.constant 0 : index
    %79 = vector.load %arg6[%c0_47, %c1_48, %c0_49] : memref<2x10x1xf32, #tpu.memory_space<vmem>>, vector<2x8x1xf32>
    tpu.vector_store %arg6[%c0_47, %c1_48, %c0_49], %73 {strides = array<i32>} : memref<2x10x1xf32, #tpu.memory_space<vmem>>, vector<2x8x1xf32>,
    %c0_50 = arith.constant 0 : index
    %c0_51 = arith.constant 0 : index
    %c0_52 = arith.constant 0 : index
    %80 = vector.load %arg5[%c0_50, %c0_51, %c0_52] : memref<2x10x1xf32, #tpu.memory_space<vmem>>, vector<2x8x1xf32>
    %81 = arith.addf %67, %80 : vector<2x8x1xf32>
    %c0_53 = arith.constant 0 : index
    %c2_54 = arith.constant 2 : index
    %c0_55 = arith.constant 0 : index
    %82 = vector.load %arg6[%c0_53, %c2_54, %c0_55] : memref<2x10x1xf32, #tpu.memory_space<vmem>>, vector<2x8x1xf32>
    %83 = arith.addf %81, %82 : vector<2x8x1xf32>
    %84 = arith.negf %83 : vector<2x8x1xf32>
    %85 = math.exp %84 : vector<2x8x1xf32>
    %cst_56 = arith.constant 1.000000e+00 : f32
    %86 = vector.broadcast %cst_56 : f32 to vector<2x8x1xf32>
    %87 = arith.addf %86, %85 : vector<2x8x1xf32>
    %88 = arith.divf %86, %87 : vector<2x8x1xf32>
    %89 = vector.broadcast %88 : vector<2x8x1xf32> to vector<2x8x256xf32>
    %90 = arith.mulf %0, %89 : vector<2x8x256xf32>
    %c0_57 = arith.constant 0 : index
    %c0_58 = arith.constant 0 : index
    %c0_59 = arith.constant 0 : index
    %91 = vector.load %arg4[%c0_57, %c0_58, %c0_59] : memref<2x8x256xf32, #tpu.memory_space<vmem>>, vector<2x8x256xf32>
    tpu.vector_store %arg4[%c0_57, %c0_58, %c0_59], %90 {strides = array<i32>} : memref<2x8x256xf32, #tpu.memory_space<vmem>>, vector<2x8x256xf32>,
    return
  }
  func.func @transform_0(%arg0: i32) -> (i32, i32, i32) {
    %c0_i32 = arith.constant 0 : i32
    %c0_i32_0 = arith.constant 0 : i32
    %c0_i32_1 = arith.constant 0 : i32
    return %arg0, %c0_i32, %c0_i32_0 : i32, i32, i32
  }
  func.func @transform_1(%arg0: i32) -> (i32, i32) {
    %c0_i32 = arith.constant 0 : i32
    %c0_i32_0 = arith.constant 0 : i32
    %c0_i32_1 = arith.constant 0 : i32
    return %c0_i32, %c0_i32_0 : i32, i32
  }
  func.func @transform_2(%arg0: i32) -> (i32, i32) {
    %c0_i32 = arith.constant 0 : i32
    %c0_i32_0 = arith.constant 0 : i32
    %c0_i32_1 = arith.constant 0 : i32
    return %c0_i32, %c0_i32_0 : i32, i32
  }
  func.func @transform_3(%arg0: i32) -> (i32, i32, i32) {
    %c0_i32 = arith.constant 0 : i32
    %c0_i32_0 = arith.constant 0 : i32
    %c0_i32_1 = arith.constant 0 : i32
    return %arg0, %c0_i32, %c0_i32_0 : i32, i32, i32
  }
}

</mosaic_0001>

<bundles_post_ra>
// kernel: tpu_custom_call.1
= control target key start
LH: loop header
LB: loop body
LE: loop exit
PB: predicated region body
PF: predicated region fallthrough
CT: control target
= control target key end

     0   :  { %8 = vsyncpa [#allocation5], 0  ;;  %s435_s0 = inlined_call_operand.hbm [shape: f32[2,8,256], index: 0, kind: input, shape index: {}]   ;;  %s436_s1 = inlined_call_operand.vmem [shape: f32[6,2], index: 1, kind: input, shape index: {}]   ;;  %s437_s2 = inlined_call_operand.vmem [shape: f32[3,2], index: 2, kind: input, shape index: {}]   ;;  %s438_s3 = inlined_call_operand.hbm [shape: f32[2,8,256], index: 3, kind: output, shape index: {}]  }
   0x1   :  { %9 = vsyncpa [#allocation6], 0  ;;  %s14_s14 = sshll.u32 %s435_s0, 4  ;;  %s337_s15 = smov [#allocation4]   ;;  %s15_s14 = int_to_ptr.hbm [resolvable:$true] %s14_s14 }
   0x2   :  { %s16_s16 = sshll.u32 %s337_s15, 4  ;;  %s338_s17 = smov 256   ;;  %s17_s16 = int_to_ptr.vmem [resolvable:$true] %s16_s16 }
   0x3   :  { %s339_s18 = smov 16  }
   0x4   :  { %22 = dma.hbm_to_vmem [thread:$0]  %s15_s14, 512, %s17_s16, [#allocation5], %s338_s17, %s338_s17, %s339_s18  }
   0x5   :  { %333 = dma.done.wait [#allocation5], 512  }
   0x6   :  { %334 = vsyncadd [#allocation5], 4294966784  ;;  %vm49_vm0 = vcmask 7168   ;;  %vm51_vm1 = vcmask 1024   ;;  %v340_v0 = vmov 0.0   ;;  %v375_v1 = vld [vmem:[#allocation4] sm:$0xff] }
   0x7   :  { %50 = vst.msk [vmem:[#allocation2] sm:$0xff] %vm49_vm0, %v340_v0  ;;  %v377_v2 = vld [vmem:[#allocation4 + $0x8] sm:$0xff]  ;;  %v385_v5 = vld [vmem:[#allocation4 + $0x10] sm:$0xff]  ;;  %v387_v6 = vld [vmem:[#allocation4 + $0x18] sm:$0xff]  ;;  %v341_v9 = vmov 0   ;;  %vm146_vm2 = vcmask 15360  }
   0x8   :  { %52 = vst.msk [vmem:[#allocation2 + $0x8] sm:$0x3] %vm51_vm1, %v340_v0  ;;  %v35_v3 = vadd.f32 %v377_v2, %v375_v1  ;;  %v43_v4 = vmax.f32 %v375_v1, %v377_v2  ;;  %v38_v7 = vadd.f32 %v387_v6, %v385_v5  ;;  %v46_v8 = vmax.f32 %v385_v5, %v387_v6  ;;  %v71_v26 = vld [vmem:[%s436_s1] sm:$0x3f]  ;;  %s253_s24 = sshll.u32 %s438_s3, 4  ;;  %s254_s24 = int_to_ptr.hbm [resolvable:$true] %s253_s24 }
   0x9   :  { %53 = vst.msk [vmem:[#allocation2 + $0x10] sm:$0xff] %vm49_vm0, %v340_v0  ;;  %275 = vset.pattern.permute.xlu0 %v341_v9  ;;  %274 = vset.pattern.permute.xlu2 %v341_v9  ;;  %v83_v28 = vperm.slane %v71_v26, 0  ;;  %v86_v29 = vperm.slane %v71_v26, 1  ;;  %v101_v31 = vperm.slane %v71_v26, 2  ;;  %v116_v33 = vperm.slane %v71_v26, 3 }
   0xa   :  { %54 = vst.msk [vmem:[#allocation2 + $0x18] sm:$0x3] %vm51_vm1, %v340_v0  ;;  %36 = vadd.xlane.f32.xlu0 %v35_v3  ;;  %44 = vmax.xlane.f32.xlu1 %v43_v4  ;;  %v121_v36 = vperm.slane %v71_v26, 4  ;;  %v136_v44 = vperm.slane %v71_v26, 5  ;;  %v72_v47 = vld [vmem:[%s437_s2] sm:$0x7] }
   0xb   :  { %55 = vst.msk [vmem:[#allocation3] sm:$0xff] %vm49_vm0, %v340_v0  ;;  %276 = vset.pattern.permute.xlu1 %v341_v9  ;;  %v162_v53 = vperm.slane %v72_v47, 2  ;;  %v143_v57 = vperm.slane %v72_v47, 0  ;;  %s342_s2 = smov [#allocation7]  }
   0xc   :  { %56 = vst.msk [vmem:[#allocation3 + $0x8] sm:$0x3] %vm51_vm1, %v340_v0  ;;  %s251_s21 = sshll.u32 %s342_s2, 4  ;;  %s252_s21 = int_to_ptr.vmem [resolvable:$true] %s251_s21 }
   0xd   :  { %57 = vst.msk [vmem:[#allocation3 + $0x10] sm:$0xff] %vm49_vm0, %v340_v0 }
   0xe   :  { %58 = vst.msk [vmem:[#allocation3 + $0x18] sm:$0x3] %vm51_vm1, %v340_v0 }
  0x12   :  { %39 = vadd.xlane.f32.xlu0 %v38_v7  ;;  %47 = vmax.xlane.f32.xlu1 %v46_v8 }
  0x7d   :  { %v37_v10 = vpop.xlane.xlu0 %36  ;;  %v45_v11 = vpop.xlane.xlu1 %44 }
  0x7e   :  { %v41_v12 = vmul.f32 0.00390625, %v37_v10  ;;  %61 = vst.msk [vmem:[#allocation3 + $0x1] sm:$0xff] %vm49_vm0, %v45_v11  ;;  %v122_v41 = vmul.f32 %v121_v36, %v45_v11 }
  0x80   :  { %59 = vst.msk [vmem:[#allocation2 + $0x1] sm:$0xff] %vm49_vm0, %v41_v12  ;;  %v87_v32 = vmul.f32 %v86_v29, %v41_v12 }
  0x85   :  { %v40_v13 = vpop.xlane.xlu0 %39  ;;  %v395_v14 = vpop.xlane.xlu1 %47  ;;  %v67_v16 = vld [vmem:[#allocation3] sm:$0xff] }
  0x86   :  { %v42_v15 = vmul.f32 0.00390625, %v40_v13  ;;  %62 = vst.msk [vmem:[#allocation3 + $0x11] sm:$0xff] %vm49_vm0, %v395_v14  ;;  %v69_v17 = vld [vmem:[#allocation3 + $0x2] sm:$0xff]  ;;  %v123_v60 = vmul.f32 %v121_v36, %v395_v14  ;;  %v153_v14 = vperm.slane %v72_v47, 1 }
  0x87   :  { %v65_v18 = vld [vmem:[#allocation2 + $0x2] sm:$0xff]  ;;  %175 = vst.msk [vmem:[#allocation3] sm:$0xff] %vm49_vm0, %v340_v0 }
  0x88   :  { %v63_v19 = vld [vmem:[#allocation2] sm:$0xff]  ;;  %60 = vst.msk [vmem:[#allocation2 + $0x11] sm:$0xff] %vm49_vm0, %v42_v15  ;;  %93 = vperm.xlu0 %275, %v65_v18   ;;  %v88_v45 = vmul.f32 %v86_v29, %v42_v15 }
  0x89   :  { %75 = vperm.xlu2 %274, %v63_v19   ;;  %172 = vst.msk [vmem:[#allocation2 + $0x8] sm:$0x3] %vm51_vm1, %v340_v0 }
  0x8a   :  { %171 = vst.msk [vmem:[#allocation2] sm:$0xff] %vm49_vm0, %v340_v0 }
  0x8b   :  { %176 = vst.msk [vmem:[#allocation3 + $0x8] sm:$0x3] %vm51_vm1, %v340_v0 }
  0x8d   :  { %v68_v20 = vld [vmem:[#allocation3 + $0x10] sm:$0xff] }
  0x8e   :  { %v70_v21 = vld [vmem:[#allocation3 + $0x12] sm:$0xff] }
  0x8f   :  { %177 = vst.msk [vmem:[#allocation3 + $0x10] sm:$0xff] %vm49_vm0, %v340_v0  ;;  %v66_v22 = vld [vmem:[#allocation2 + $0x12] sm:$0xff] }
  0x90   :  { %v64_v23 = vld [vmem:[#allocation2 + $0x10] sm:$0xff]  ;;  %178 = vst.msk [vmem:[#allocation3 + $0x18] sm:$0x3] %vm51_vm1, %v340_v0  ;;  %98 = vperm.xlu1 %276, %v66_v22  }
  0x91   :  { %174 = vst.msk [vmem:[#allocation2 + $0x18] sm:$0x3] %vm51_vm1, %v340_v0  ;;  %80 = vperm.xlu2 %274, %v64_v23  }
  0x92   :  { %173 = vst.msk [vmem:[#allocation2 + $0x10] sm:$0xff] %vm49_vm0, %v340_v0 }
  0x99   :  { %108 = vperm.xlu2 %274, %v67_v16  }
  0xa1   :  { %113 = vperm.xlu2 %274, %v68_v20  }
  0xa9   :  { %128 = vperm.xlu2 %274, %v69_v17  }
  0xb1   :  { %133 = vperm.xlu2 %274, %v70_v21  }
  0xe3   :  { %v76_v24 = vpop.permute.xlu2 %75 }
  0xe4   :  { %v84_v30 = vmul.f32 %v83_v28, %v76_v24 }
  0xe6   :  { %v89_v37 = vadd.f32 %v87_v32, %v84_v30 }
  0xeb   :  { %v81_v25 = vpop.permute.xlu2 %80 }
  0xec   :  { %v85_v42 = vmul.f32 %v83_v28, %v81_v25 }
  0xee   :  { %v90_v50 = vadd.f32 %v88_v45, %v85_v42 }
  0xf3   :  { %v109_v27 = vpop.permute.xlu2 %108 }
  0xf4   :  { %v117_v39 = vmul.f32 %v116_v33, %v109_v27 }
  0xfa   :  { %v94_v35 = vpop.permute.xlu0 %93 }
  0xfb   :  { %v114_v34 = vpop.permute.xlu2 %113  ;;  %v102_v38 = vmul.f32 %v101_v31, %v94_v35 }
  0xfc   :  { %v118_v54 = vmul.f32 %v116_v33, %v114_v34 }
  0xfd   :  { %v104_v40 = vadd.f32 %v102_v38, %v89_v37 }
  0xff   :  { %v119_v43 = vadd.f32 %v117_v39, %v104_v40 }
 0x101   :  { %v124_v46 = vadd.f32 %v122_v41, %v119_v43 }
 0x102   :  { %v99_v48 = vpop.permute.xlu1 %98 }
 0x103   :  { %v129_v49 = vpop.permute.xlu2 %128  ;;  %v103_v51 = vmul.f32 %v101_v31, %v99_v48 }
 0x104   :  { %v137_v52 = vmul.f32 %v136_v44, %v129_v49 }
 0x105   :  { %v105_v55 = vadd.f32 %v103_v51, %v90_v50 }
 0x106   :  { %v139_v56 = vadd.f32 %v137_v52, %v124_v46 }
 0x107   :  { %v120_v58 = vadd.f32 %v118_v54, %v105_v55 }
 0x108   :  { %v141_v59 = vmax.f32 %v139_v56, 0.0 }
 0x109   :  { %v125_v0 = vadd.f32 %v123_v60, %v120_v58 }
 0x10a   :  { %v163_v61 = vmul.f32 %v162_v53, %v141_v59  ;;  %v144_v62 = vmul.f32 %v143_v57, %v141_v59  ;;  %v154_v15 = vmul.f32 %v153_v14, %v141_v59 }
 0x10b   :  { %v134_v63 = vpop.permute.xlu2 %133 }
 0x10c   :  { %v138_v3 = vmul.f32 %v136_v44, %v134_v63  ;;  %v165_v4 = vsel %vm146_vm2, %v163_v61, 0.0  ;;  %v147_v7 = vsel %vm146_vm2, %v144_v62, 0.0  ;;  %v156_v17 = vsel %vm146_vm2, %v154_v15, 0.0 }
 0x10d   :  { %166 = vadd.xlane.f32.xlu0 %v165_v4  ;;  %148 = vadd.xlane.f32.xlu1 %v147_v7 }
 0x10e   :  { %v140_v8 = vadd.f32 %v138_v3, %v125_v0 }
 0x110   :  { %v142_v9 = vmax.f32 %v140_v8, 0.0 }
 0x112   :  { %v145_v10 = vmul.f32 %v143_v57, %v142_v9  ;;  %v164_v11 = vmul.f32 %v162_v53, %v142_v9  ;;  %v155_v16 = vmul.f32 %v153_v14, %v142_v9 }
 0x114   :  { %v150_v12 = vsel %vm146_vm2, %v145_v10, 0.0  ;;  %v168_v13 = vsel %vm146_vm2, %v164_v11, 0.0  ;;  %v159_v18 = vsel %vm146_vm2, %v155_v16, 0.0 }
 0x115   :  { %151 = vadd.xlane.f32.xlu2 %v150_v12  ;;  %169 = vadd.xlane.f32.xlu1 %v168_v13 }
 0x11d   :  { %157 = vadd.xlane.f32.xlu2 %v156_v17  ;;  %160 = vadd.xlane.f32.xlu1 %v159_v18 }
 0x180   :  { %v167_v19 = vpop.xlane.xlu0 %166  ;;  %v149_v20 = vpop.xlane.xlu1 %148 }
 0x181   :  { %181 = vst.msk [vmem:[#allocation3 + $0x1] sm:$0xff] %vm49_vm0, %v167_v19 }
 0x182   :  { %179 = vst.msk [vmem:[#allocation2 + $0x1] sm:$0xff] %vm49_vm0, %v149_v20 }
 0x188   :  { %v152_v21 = vpop.xlane.xlu2 %151  ;;  %v170_v22 = vpop.xlane.xlu1 %169  ;;  %v187_v29 = vld [vmem:[#allocation3 + $0x2] sm:$0xff] }
 0x189   :  { %180 = vst.msk [vmem:[#allocation2 + $0x11] sm:$0xff] %vm49_vm0, %v152_v21  ;;  %v183_v24 = vld [vmem:[#allocation2] sm:$0xff] }
 0x18a   :  { %182 = vst.msk [vmem:[#allocation3 + $0x11] sm:$0xff] %vm49_vm0, %v170_v22 }
 0x190   :  { %v158_v23 = vpop.xlane.xlu2 %157  ;;  %v184_v25 = vld [vmem:[#allocation2 + $0x10] sm:$0xff]  ;;  %v161_v26 = vpop.xlane.xlu1 %160 }
 0x191   :  { %v185_v27 = vadd.f32 %v183_v24, %v158_v23  ;;  %v186_v28 = vadd.f32 %v184_v25, %v161_v26  ;;  %v188_v30 = vld [vmem:[#allocation3 + $0x12] sm:$0xff] }
 0x193   :  { %v189_v31 = vadd.f32 %v187_v29, %v185_v27  ;;  %v190_v32 = vadd.f32 %v188_v30, %v186_v28 }
 0x195   :  { %v266_v33 = vmul.f32 -1.442695, %v189_v31  ;;  %v267_v34 = vmul.f32 -1.442695, %v190_v32 }
 0x197   :  { %277 = vpow2.f32 %v266_v33 }
 0x198   :  { %279 = vpow2.f32 %v267_v34 }
 0x19d   :  { %v278_v35 = vpop.eup %277 }
 0x19e   :  { %v280_v36 = vpop.eup %279  ;;  %v197_v37 = vadd.f32 1.0, %v278_v35 }
 0x19f   :  { %v198_v38 = vadd.f32 1.0, %v280_v36 }
 0x1a0   :  { %281 = vrcp.f32 %v197_v37  ;;  %v210_v44 = vand.u32 2147483648, %v197_v37  ;;  %v208_v47 = vand.u32 2147483647, %v197_v37  ;;  %vm204_vm5 = vweird.f32 %v197_v37 }
 0x1a1   :  { %283 = vrcp.f32 %v198_v38  ;;  %v225_v48 = vand.u32 2147483648, %v198_v38  ;;  %v223_v50 = vand.u32 2147483647, %v198_v38  ;;  %vm219_vm7 = vweird.f32 %v198_v38 }
 0x1a2   :  { %v211_v52 = vor.u32 1.1754944e-38, %v210_v44  ;;  %vm209_vm8 = vcmp.eq.f32.partialorder %v208_v47, 8.507059e+37 }
 0x1a3   :  { %v226_v55 = vor.u32 1.1754944e-38, %v225_v48  ;;  %vm224_vm10 = vcmp.eq.f32.partialorder %v223_v50, 8.507059e+37 }
 0x1a6   :  { %v282_v39 = vpop.eup %281 }
 0x1a7   :  { %v284_v40 = vpop.eup %283  ;;  %v200_v41 = vmul.f32 %v282_v39, %v197_v37  ;;  %vm205_vm3 = vweird.f32 %v282_v39 }
 0x1a8   :  { %v215_v42 = vmul.f32 %v284_v40, %v198_v38  ;;  %vm220_vm4 = vweird.f32 %v284_v40  ;;  %vm206_vm6 = vmor %vm204_vm5, %vm205_vm3 }
 0x1a9   :  { %v201_v43 = vsub.f32 1.0, %v200_v41  ;;  %vm221_vm9 = vmor %vm219_vm7, %vm220_vm4 }
 0x1aa   :  { %v216_v45 = vsub.f32 1.0, %v215_v42 }
 0x1ab   :  { %v202_v46 = vmul.f32 %v282_v39, %v201_v43 }
 0x1ac   :  { %v217_v49 = vmul.f32 %v284_v40, %v216_v45 }
 0x1ad   :  { %v203_v51 = vadd.f32 %v282_v39, %v202_v46 }
 0x1ae   :  { %v218_v53 = vadd.f32 %v284_v40, %v217_v49 }
 0x1af   :  { %v207_v54 = vsel %vm206_vm6, %v282_v39, %v203_v51 }
 0x1b0   :  { %v212_v56 = vsel %vm209_vm8, %v211_v52, %v207_v54  ;;  %v222_v57 = vsel %vm221_vm9, %v284_v40, %v218_v53 }
 0x1b1   :  { %231 = vperm.xlu2 %274, %v212_v56   ;;  %v227_v58 = vsel %vm224_vm10, %v226_v55, %v222_v57 }
 0x1b2   :  { %236 = vperm.xlu0 %275, %v227_v58  }
 0x20b   :  { %v232_v59 = vpop.permute.xlu2 %231 }
 0x20c   :  { %v239_v60 = vmul.f32 %v232_v59, %v375_v1  ;;  %v240_v61 = vmul.f32 %v232_v59, %v377_v2 }
 0x20e   :  { %243 = vst [vmem:[#allocation7] sm:$0xff] %v239_v60 }
 0x20f   :  { %244 = vst [vmem:[#allocation7 + $0x8] sm:$0xff] %v240_v61 }
 0x224   :  { %v237_v62 = vpop.permute.xlu0 %236 }
 0x225   :  { %v241_v63 = vmul.f32 %v237_v62, %v385_v5  ;;  %v242_v0 = vmul.f32 %v237_v62, %v387_v6 }
 0x227   :  { %245 = vst [vmem:[#allocation7 + $0x10] sm:$0xff] %v241_v63 }
 0x228   :  { %246 = vst [vmem:[#allocation7 + $0x18] sm:$0xff] %v242_v0 }
 0x229   :  { %259 = dma.vmem_to_hbm [thread:$0]  %s252_s21, 512, %s254_s24, [#allocation6], %s338_s17, %s338_s17, %s339_s18  }
 0x22a   :  { %335 = dma.done.wait [#allocation6], 512  }
 0x22b   :  { %336 = vsyncadd [#allocation6], 4294966784 }
 0x22c   :  { %264 = vsyncpa [#allocation5], 1 }
 0x22d   :  { %265 = vsyncpa [#allocation6], 1 }

</bundles_post_ra>
